<compile_context>
chip_gen: v6e
topology: v6e:2x2x1
jax: 0.10.0
libtpu: 0.0.40
codegen_flags: <defaults>
</compile_context>

<pallas_src>
import functools

import jax
import jax.numpy as jnp
from jax.experimental import pallas as pl
from jax.experimental.pallas import tpu as pltpu


def _round_up(x, m):
    return (x + m - 1) // m * m


def _vmem_capacity_bytes():
    """Physical VMEM of the local TPU generation; conservative (v7x, 64 MiB) fallback."""
    try:
        return int(pltpu.get_tpu_info().vmem_capacity_bytes)
    except Exception:
        return 64 * 2**20


def _cross_entropy_kernel(logits_ref, targets_ref, out_ref, m_sc, l_sc, t_sc, *,
                          n_total, n_classes, tile_n, tile_c, c_ragged):
    """One (tile_n, tile_c) block: online logsumexp + running target-logit accumulation."""
    i = pl.program_id(0)    # row tile  ("parallel" -> megacore-shardable)
    kc = pl.program_id(1)   # class block ("arbitrary" reduction axis)

    @pl.when(kc == 0)
    def _init():
        m_sc[...] = jnp.full((tile_n, 1), -jnp.inf, dtype=jnp.float32)
        l_sc[...] = jnp.zeros((tile_n, 1), dtype=jnp.float32)
        t_sc[...] = jnp.zeros((tile_n, 1), dtype=jnp.float32)

    logits = logits_ref[...].astype(jnp.float32)          # (tile_n, tile_c)
    tgt = targets_ref[...]                                 # (tile_n, 1) int32

    # Global class index of every lane in this block.
    col = kc * tile_c + jax.lax.broadcasted_iota(jnp.int32, logits.shape, dimension=1)

    # Target logit taken from the ORIGINAL logits (independent of the running max), so the
    # shifted tensor below only feeds exp and never has to stay live.
    t_sc[...] += jnp.sum(jnp.where(col == tgt, logits, 0.0), axis=-1, keepdims=True)

    if c_ragged:
        # Ragged last class block: neutralize out-of-range lanes for the logsumexp.
        logits = jnp.where(col < n_classes, logits, jnp.float32(-1e30))

    # Online (flash-style) logsumexp update.
    m_prev = m_sc[...]
    m_new = jnp.maximum(m_prev, jnp.max(logits, axis=-1, keepdims=True))
    l_sc[...] = l_sc[...] * jnp.exp(m_prev - m_new) + jnp.sum(
        jnp.exp(logits - m_new), axis=-1, keepdims=True)
    m_sc[...] = m_new

    @pl.when(kc == pl.num_programs(1) - 1)
    def _finalize():
        # per-row loss = logsumexp(logits) - logits[target]
        per_row = m_sc[...] + jnp.log(l_sc[...]) - t_sc[...]          # (tile_n, 1)
        # Mask rows past the real batch size (ragged last row tile). jnp.where is a select,
        # so garbage padded rows never reach the partial sum.
        row = i * tile_n + jax.lax.broadcasted_iota(jnp.int32, per_row.shape, dimension=0)
        out_ref[0, 0] = jnp.sum(jnp.where(row < n_total, per_row, 0.0))


def basic_classification_loss(pred_labels, gt_labels, tile_n=None, tile_c=None):
    """CrossEntropyLoss(pred_labels, gt_labels) with mean reduction.

    pred_labels: (N, C) float logits (f32 or bf16 — bf16 is upcast inside the kernel)
    gt_labels:   (N,)   integer class indices
    Returns a scalar float32 loss.
    """
    n, c = pred_labels.shape
    targets = gt_labels.astype(jnp.int32).reshape(n, 1)

    itemsize = jnp.dtype(pred_labels.dtype).itemsize
    sub = {4: 8, 2: 16, 1: 32}.get(itemsize, 8)     # sublane multiple for the block rows

    # Generation-aware VMEM budget: ~48 MiB usable on v7x, ~96 MiB on v5e/v6e.
    cap = _vmem_capacity_bytes()
    vmem_limit = int(min(cap * 3 // 4, 112 * 2**20))
    budget = vmem_limit * 2 // 3                     # headroom for compiler temps

    def bytes_per_row(tc):
        # 3x-buffered logits block + ~2 f32 working copies of the block
        # + lane-padded (x,1) int32 targets block (2 bufs) + 3 lane-padded f32 scratch columns.
        return 3 * tc * itemsize + 2 * tc * 4 + 2 * 128 * 4 + 3 * 128 * 4

    # ---- class (lane) blocking: full C when it fits comfortably, else 128-aligned blocks ----
    if tile_c is None:
        tile_c = c if (budget // bytes_per_row(c)) >= 256 else 2048
    if tile_c >= c:
        tile_c = c
    else:
        tile_c = _round_up(tile_c, 128)
        tile_c = min(tile_c, _round_up(c, 128))
    n_c_blocks = pl.cdiv(c, tile_c)
    c_ragged = (n_c_blocks * tile_c != c)

    # ---- row (sublane) tiling: as big as the VMEM budget allows, capped at 8192 rows ----
    max_rows = max(sub, budget // bytes_per_row(tile_c))
    if tile_n is None:
        tile_n = min(8192, max_rows)
    tile_n = min(tile_n, _round_up(n, sub))          # never bigger than (rounded) N
    tile_n = _round_up(max(tile_n, sub), sub)        # enforce (8,128)/(16,128) sublane rule

    n_tiles = pl.cdiv(n, tile_n)
    grid = (n_tiles, n_c_blocks)

    # Triple-buffer the logits stream when the grid is long enough to benefit.
    logits_spec_kwargs = {}
    if n_tiles * n_c_blocks >= 3:
        logits_spec_kwargs["pipeline_mode"] = pl.Buffered(3)

    kernel = functools.partial(
        _cross_entropy_kernel, n_total=n, n_classes=c,
        tile_n=tile_n, tile_c=tile_c, c_ragged=c_ragged)

    partial_sums = pl.pallas_call(
        kernel,
        grid=grid,
        out_shape=jax.ShapeDtypeStruct((n_tiles, 1), jnp.float32),
        in_specs=[
            pl.BlockSpec((tile_n, tile_c), lambda i, kc: (i, kc), **logits_spec_kwargs),
            pl.BlockSpec((tile_n, 1), lambda i, kc: (i, 0)),   # int32 targets (kc-invariant)
        ],
        # One (1,1) SMEM scalar per row tile -> every grid row is independent ("parallel").
        out_specs=pl.BlockSpec((1, 1), lambda i, kc: (i, 0), memory_space=pltpu.SMEM),
        scratch_shapes=[
            pltpu.VMEM((tile_n, 1), jnp.float32),   # running max
            pltpu.VMEM((tile_n, 1), jnp.float32),   # running sum(exp)
            pltpu.VMEM((tile_n, 1), jnp.float32),   # running target logit
        ],
        compiler_params=pltpu.CompilerParams(
            dimension_semantics=("parallel", "arbitrary"),
            vmem_limit_bytes=vmem_limit,
        ),
        cost_estimate=pl.CostEstimate(
            flops=int(6 * n * c),
            transcendentals=int(n * c + 2 * n),
            bytes_accessed=int(n * c * itemsize + n * 4 + n_tiles * 4),
        ),
    )(pred_labels, targets)

    return jnp.sum(partial_sums) / jnp.float32(n)


if __name__ == "__main__":
    key = jax.random.PRNGKey(0)
    k1, k2, k3, k4, k5, k6 = jax.random.split(key, 6)

    # 1) Small demo consistent with the module: 8 samples, 32 classes (single tile).
    N, C = 8, 32
    pred = jax.random.normal(k1, (N, C), dtype=jnp.float32)
    gt = jax.random.randint(k2, (N,), 0, C, dtype=jnp.int32)
    loss = basic_classification_loss(pred, gt)
    jax.block_until_ready(loss)
    ref = jnp.mean(jax.nn.logsumexp(pred, axis=-1) - pred[jnp.arange(N), gt])
    assert jnp.allclose(loss, ref, atol=1e-5, rtol=1e-5), (loss, ref)

    # 2) Ragged batch + multi-row-tile "parallel" axis: N=20, tile_n=8 -> 3 tiles,
    #    last tile has only 4 valid rows. Also exercises the Buffered(3) input pipeline.
    N2, C2 = 20, 32
    pred2 = jax.random.normal(k3, (N2, C2), dtype=jnp.float32)
    gt2 = jax.random.randint(k4, (N2,), 0, C2, dtype=jnp.int32)
    loss2 = basic_classification_loss(pred2, gt2, tile_n=8)
    jax.block_until_ready(loss2)
    ref2 = jnp.mean(jax.nn.logsumexp(pred2, axis=-1) - pred2[jnp.arange(N2), gt2])
    assert jnp.allclose(loss2, ref2, atol=1e-5, rtol=1e-5), (loss2, ref2)

    # 3) Class-blocked (online logsumexp) path: C=256 split into two 128-lane blocks.
    N3, C3 = 64, 256
    pred3 = jax.random.normal(k5, (N3, C3), dtype=jnp.float32)
    gt3 = jax.random.randint(k6, (N3,), 0, C3, dtype=jnp.int32)
    loss3 = basic_classification_loss(pred3, gt3, tile_c=128)
    jax.block_until_ready(loss3)
    ref3 = jnp.mean(jax.nn.logsumexp(pred3, axis=-1) - pred3[jnp.arange(N3), gt3])
    assert jnp.allclose(loss3, ref3, atol=1e-5, rtol=1e-5), (loss3, ref3)

    print("KERNEL_OK")
</pallas_src>

<mosaic_0001>
module attributes {stable_mosaic.version = 11 : i64} {
  func.func @_cross_entropy_kernel(%arg0: i32, %arg1: i32, %arg2: memref<8x32xf32, #tpu.memory_space<vmem>>, %arg3: memref<8x1xi32, #tpu.memory_space<vmem>>, %arg4: memref<1x1xf32, #tpu.memory_space<smem>>, %arg5: memref<8x1xf32, #tpu.memory_space<vmem>>, %arg6: memref<8x1xf32, #tpu.memory_space<vmem>>, %arg7: memref<8x1xf32, #tpu.memory_space<vmem>>) attributes {dimension_semantics = [#tpu.dimension_semantics<parallel>, #tpu.dimension_semantics<arbitrary>], iteration_bounds = array<i64: 1, 1>, scalar_prefetch = 0 : i64, scratch_operands = 3 : i64, tpu.core_type = #tpu.core_type<tc>, window_params = [{transform_indices = @transform_0, window_bounds = array<i64: 8, 32>}, {transform_indices = @transform_1, window_bounds = array<i64: 8, 1>}, {transform_indices = @transform_2, window_bounds = array<i64: 1, 1>}]} {
    %c0_i32 = arith.constant 0 : i32
    %0 = arith.cmpi eq, %arg1, %c0_i32 : i32
    %1 = arith.extui %0 : i1 to i32
    %c0_i32_0 = arith.constant 0 : i32
    %2 = arith.cmpi ne, %1, %c0_i32_0 : i32
    scf.if %2 {
      %cst_21 = arith.constant 0xFF800000 : f32
      %37 = vector.broadcast %cst_21 : f32 to vector<8x1xf32>
      %c0_22 = arith.constant 0 : index
      %c0_23 = arith.constant 0 : index
      %38 = vector.load %arg5[%c0_22, %c0_23] : memref<8x1xf32, #tpu.memory_space<vmem>>, vector<8x1xf32>
      tpu.vector_store %arg5[%c0_22, %c0_23], %37 {strides = array<i32>} : memref<8x1xf32, #tpu.memory_space<vmem>>, vector<8x1xf32>,
      %cst_24 = arith.constant 0.000000e+00 : f32
      %39 = vector.broadcast %cst_24 : f32 to vector<8x1xf32>
      %c0_25 = arith.constant 0 : index
      %c0_26 = arith.constant 0 : index
      %40 = vector.load %arg6[%c0_25, %c0_26] : memref<8x1xf32, #tpu.memory_space<vmem>>, vector<8x1xf32>
      tpu.vector_store %arg6[%c0_25, %c0_26], %39 {strides = array<i32>} : memref<8x1xf32, #tpu.memory_space<vmem>>, vector<8x1xf32>,
      %cst_27 = arith.constant 0.000000e+00 : f32
      %41 = vector.broadcast %cst_27 : f32 to vector<8x1xf32>
      %c0_28 = arith.constant 0 : index
      %c0_29 = arith.constant 0 : index
      %42 = vector.load %arg7[%c0_28, %c0_29] : memref<8x1xf32, #tpu.memory_space<vmem>>, vector<8x1xf32>
      tpu.vector_store %arg7[%c0_28, %c0_29], %41 {strides = array<i32>} : memref<8x1xf32, #tpu.memory_space<vmem>>, vector<8x1xf32>,
    } else {
    }
    %c0 = arith.constant 0 : index
    %c0_1 = arith.constant 0 : index
    %3 = vector.load %arg2[%c0, %c0_1] : memref<8x32xf32, #tpu.memory_space<vmem>>, vector<8x32xf32>
    %c0_2 = arith.constant 0 : index
    %c0_3 = arith.constant 0 : index
    %4 = vector.load %arg3[%c0_2, %c0_3] : memref<8x1xi32, #tpu.memory_space<vmem>>, vector<8x1xi32>
    %c32_i32 = arith.constant 32 : i32
    %5 = arith.muli %arg1, %c32_i32 : i32
    %6 = tpu.iota {dimensions = array<i32: 1>} : vector<8x32xi32>
    %7 = vector.broadcast %5 : i32 to vector<8x32xi32>
    %8 = arith.addi %7, %6 : vector<8x32xi32>
    %c0_4 = arith.constant 0 : index
    %c0_5 = arith.constant 0 : index
    %9 = vector.load %arg7[%c0_4, %c0_5] : memref<8x1xf32, #tpu.memory_space<vmem>>, vector<8x1xf32>
    %10 = vector.broadcast %4 : vector<8x1xi32> to vector<8x32xi32>
    %11 = arith.cmpi eq, %8, %10 : vector<8x32xi32>
    %cst = arith.constant 0.000000e+00 : f32
    %12 = vector.broadcast %cst : f32 to vector<8x32xf32>
    %13 = arith.select %11, %3, %12 : vector<8x32xi1>, vector<8x32xf32>
    %cst_6 = arith.constant dense<0.000000e+00> : vector<8xf32>
    %14 = vector.multi_reduction <add>, %13, %cst_6 [1] : vector<8x32xf32> to vector<8xf32>
    %15 = vector.shape_cast %14 : vector<8xf32> to vector<8x1xf32>
    %16 = arith.addf %9, %15 : vector<8x1xf32>
    %c0_7 = arith.constant 0 : index
    %c0_8 = arith.constant 0 : index
    %17 = vector.load %arg7[%c0_7, %c0_8] : memref<8x1xf32, #tpu.memory_space<vmem>>, vector<8x1xf32>
    tpu.vector_store %arg7[%c0_7, %c0_8], %16 {strides = array<i32>} : memref<8x1xf32, #tpu.memory_space<vmem>>, vector<8x1xf32>,
    %c0_9 = arith.constant 0 : index
    %c0_10 = arith.constant 0 : index
    %18 = vector.load %arg5[%c0_9, %c0_10] : memref<8x1xf32, #tpu.memory_space<vmem>>, vector<8x1xf32>
    %cst_11 = arith.constant dense<0xFF800000> : vector<8xf32>
    %19 = vector.multi_reduction <maximumf>, %3, %cst_11 [1] : vector<8x32xf32> to vector<8xf32>
    %20 = vector.shape_cast %19 : vector<8xf32> to vector<8x1xf32>
    %21 = arith.maximumf %18, %20 : vector<8x1xf32>
    %c0_12 = arith.constant 0 : index
    %c0_13 = arith.constant 0 : index
    %22 = vector.load %arg6[%c0_12, %c0_13] : memref<8x1xf32, #tpu.memory_space<vmem>>, vector<8x1xf32>
    %23 = arith.subf %18, %21 : vector<8x1xf32>
    %24 = math.exp %23 : vector<8x1xf32>
    %25 = arith.mulf %22, %24 : vector<8x1xf32>
    %26 = vector.broadcast %21 : vector<8x1xf32> to vector<8x32xf32>
    %27 = arith.subf %3, %26 : vector<8x32xf32>
    %28 = math.exp %27 : vector<8x32xf32>
    %cst_14 = arith.constant dense<0.000000e+00> : vector<8xf32>
    %29 = vector.multi_reduction <add>, %28, %cst_14 [1] : vector<8x32xf32> to vector<8xf32>
    %30 = vector.shape_cast %29 : vector<8xf32> to vector<8x1xf32>
    %31 = arith.addf %25, %30 : vector<8x1xf32>
    %c0_15 = arith.constant 0 : index
    %c0_16 = arith.constant 0 : index
    %32 = vector.load %arg6[%c0_15, %c0_16] : memref<8x1xf32, #tpu.memory_space<vmem>>, vector<8x1xf32>
    tpu.vector_store %arg6[%c0_15, %c0_16], %31 {strides = array<i32>} : memref<8x1xf32, #tpu.memory_space<vmem>>, vector<8x1xf32>,
    %c0_17 = arith.constant 0 : index
    %c0_18 = arith.constant 0 : index
    %33 = vector.load %arg5[%c0_17, %c0_18] : memref<8x1xf32, #tpu.memory_space<vmem>>, vector<8x1xf32>
    tpu.vector_store %arg5[%c0_17, %c0_18], %21 {strides = array<i32>} : memref<8x1xf32, #tpu.memory_space<vmem>>, vector<8x1xf32>,
    %c0_i32_19 = arith.constant 0 : i32
    %34 = arith.cmpi eq, %arg1, %c0_i32_19 : i32
    %35 = arith.extui %34 : i1 to i32
    %c0_i32_20 = arith.constant 0 : i32
    %36 = arith.cmpi ne, %35, %c0_i32_20 : i32
    scf.if %36 {
      %c0_21 = arith.constant 0 : index
      %c0_22 = arith.constant 0 : index
      %37 = vector.load %arg5[%c0_21, %c0_22] : memref<8x1xf32, #tpu.memory_space<vmem>>, vector<8x1xf32>
      %c0_23 = arith.constant 0 : index
      %c0_24 = arith.constant 0 : index
      %38 = vector.load %arg6[%c0_23, %c0_24] : memref<8x1xf32, #tpu.memory_space<vmem>>, vector<8x1xf32>
      %39 = math.log %38 : vector<8x1xf32>
      %40 = arith.addf %37, %39 : vector<8x1xf32>
      %c0_25 = arith.constant 0 : index
      %c0_26 = arith.constant 0 : index
      %41 = vector.load %arg7[%c0_25, %c0_26] : memref<8x1xf32, #tpu.memory_space<vmem>>, vector<8x1xf32>
      %42 = arith.subf %40, %41 : vector<8x1xf32>
      %c8_i32 = arith.constant 8 : i32
      %43 = arith.muli %arg0, %c8_i32 : i32
      %44 = tpu.iota {dimensions = array<i32: 0>} : vector<8x1xi32>
      %45 = vector.broadcast %43 : i32 to vector<8x1xi32>
      %46 = arith.addi %45, %44 : vector<8x1xi32>
      %c8_i32_27 = arith.constant 8 : i32
      %47 = vector.broadcast %c8_i32_27 : i32 to vector<8x1xi32>
      %48 = arith.cmpi slt, %46, %47 : vector<8x1xi32>
      %cst_28 = arith.constant 0.000000e+00 : f32
      %49 = vector.broadcast %cst_28 : f32 to vector<8x1xf32>
      %50 = arith.select %48, %42, %49 : vector<8x1xi1>, vector<8x1xf32>
      %51 = vector.shape_cast %50 : vector<8x1xf32> to vector<1x8x1xf32>
      %cst_29 = arith.constant dense<0.000000e+00> : vector<1xf32>
      %52 = vector.multi_reduction <add>, %51, %cst_29 [1, 2] : vector<1x8x1xf32> to vector<1xf32>
      %53 = vector.shape_cast %52 : vector<1xf32> to vector<1x1x1xf32>
      %54 = vector.extract %53[0, 0, 0] : f32 from vector<1x1x1xf32>
      %c0_30 = arith.constant 0 : index
      %c0_31 = arith.constant 0 : index
      %55 = memref.load %arg4[%c0_30, %c0_31] : memref<1x1xf32, #tpu.memory_space<smem>>
      memref.store %54, %arg4[%c0_30, %c0_31] : memref<1x1xf32, #tpu.memory_space<smem>>
    } else {
    }
    return
  }
  func.func @transform_0(%arg0: i32, %arg1: i32) -> (i32, i32) {
    %c0_i32 = arith.constant 0 : i32
    return %arg0, %arg1 : i32, i32
  }
  func.func @transform_1(%arg0: i32, %arg1: i32) -> (i32, i32) {
    %c0_i32 = arith.constant 0 : i32
    %c0_i32_0 = arith.constant 0 : i32
    return %arg0, %c0_i32 : i32, i32
  }
  func.func @transform_2(%arg0: i32, %arg1: i32) -> (i32, i32) {
    %c0_i32 = arith.constant 0 : i32
    %c0_i32_0 = arith.constant 0 : i32
    return %arg0, %c0_i32 : i32, i32
  }
}

</mosaic_0001>

<bundles_post_ra>
// kernel: tpu_custom_call.1
= control target key start
LH: loop header
LB: loop body
LE: loop exit
PB: predicated region body
PF: predicated region fallthrough
CT: control target
= control target key end

     0   :  { %vm33_vm0 = vcmask 261120   ;;  %s168_s0 = inlined_call_operand.vmem [shape: f32[8,32], index: 0, kind: input, shape index: {}]   ;;  %s169_s1 = inlined_call_operand.vmem [shape: s32[8,1], index: 1, kind: input, shape index: {}]   ;;  %s170_s2 = inlined_call_operand.hbm [shape: f32[1,1], index: 2, kind: output, shape index: {}]  }
   0x1   :  { %v20_v0 = vld [vmem:[%s168_s0] sm:$0xff] }
   0x2   :  { %7 = vsyncpa [#allocation6], 0  ;;  %v41_v1 = vsel %vm33_vm0, %v20_v0, -inf  ;;  %vm16_vm1 = vcmask 7168   ;;  %v130_v2 = vmov -inf   ;;  %v131_v3 = vmov 0  }
   0x3   :  { %42 = vmax.xlane.f32.xlu0 %v41_v1  ;;  %17 = vst.msk [vmem:[#allocation2] sm:$0xff] %vm16_vm1, %v130_v2  ;;  %113 = vset.pattern.permute.xlu1 %v131_v3  ;;  %v21_v4 = vld [vmem:[%s169_s1] sm:$0xff]  ;;  %v132_v5 = vmov 0.0   ;;  %v23_v13 = vlaneseq  ;;  %s133_s1 = smov [#allocation5]  }
   0x4   :  { %112 = vset.pattern.permute.xlu0 %v131_v3  ;;  %29 = vperm.xlu1 %113, %v21_v4   ;;  %18 = vst.msk [vmem:[#allocation3] sm:$0xff] %vm16_vm1, %v132_v5  ;;  %19 = vst.msk [vmem:[#allocation4] sm:$0xff] %vm16_vm1, %v132_v5 }
   0x5   :  { %v24_v14 = vand.u32 127, %v23_v13 }
   0xa   :  { %v40_v6 = vld [vmem:[#allocation2] sm:$0xff] }
   0xb   :  { %v45_v22 = vld [vmem:[#allocation3] sm:$0xff]  ;;  %v27_v26 = vld [vmem:[#allocation4] sm:$0xff] }
  0x7f   :  { %v30_v15 = vpop.permute.xlu1 %29 }
  0x80   :  { %vm31_vm2 = vcmp.eq.s32.totalorder %v24_v14, %v30_v15 }
  0x81   :  { %v32_v17 = vsel %vm31_vm2, %v20_v0, 0.0 }
  0x82   :  { %v34_v19 = vsel %vm33_vm0, %v32_v17, 0.0 }
  0x8c   :  { %v43_v7 = vpop.xlane.xlu0 %42 }
  0x8d   :  { %v44_v8 = vmax.f32 %v40_v6, %v43_v7 }
  0x8f   :  { %v46_v9 = vsub.f32 %v40_v6, %v44_v8  ;;  %63 = vst.msk [vmem:[#allocation2] sm:$0xff] %vm16_vm1, %v44_v8  ;;  %52 = vperm.xlu0 %112, %v44_v8  }
  0x91   :  { %v47_v20 = vmul.f32 1.442695, %v46_v9 }
  0x96   :  { %v67_v32 = vld [vmem:[#allocation2] sm:$0xff] }
 0x10a   :  { %v53_v10 = vpop.permute.xlu0 %52 }
 0x10b   :  { %v55_v11 = vsub.f32 %v20_v0, %v53_v10 }
 0x10d   :  { %v56_v12 = vmul.f32 1.442695, %v55_v11 }
 0x10f   :  { %114 = vpow2.f32 %v56_v12 }
 0x110   :  { %116 = vpow2.f32 %v47_v20 }
 0x11c   :  { %v115_v16 = vpop.eup %114 }
 0x11d   :  { %v58_v18 = vsel %vm33_vm0, %v115_v16, 0.0  ;;  %v117_v21 = vpop.eup %116 }
 0x11e   :  { %59 = vadd.xlane.f32.xlu1 %v58_v18  ;;  %v49_v23 = vmul.f32 %v117_v21, %v45_v22 }
 0x122   :  { %35 = vadd.xlane.f32.xlu1 %v34_v19 }
 0x1a7   :  { %v60_v24 = vpop.xlane.xlu1 %59 }
 0x1a8   :  { %v61_v25 = vadd.f32 %v60_v24, %v49_v23 }
 0x1aa   :  { %62 = vst.msk [vmem:[#allocation3] sm:$0xff] %vm16_vm1, %v61_v25 }
 0x1ab   :  { %v36_v27 = vpop.xlane.xlu1 %35 }
 0x1ac   :  { %v37_v28 = vadd.f32 %v36_v27, %v27_v26 }
 0x1ae   :  { %39 = vst.msk [vmem:[#allocation4] sm:$0xff] %vm16_vm1, %v37_v28 }
 0x1b1   :  { %v68_v29 = vld [vmem:[#allocation3] sm:$0xff] }
 0x1b2   :  { %118 = vlog2.f32 %v68_v29 }
 0x1b5   :  { %v72_v33 = vld [vmem:[#allocation4] sm:$0xff] }
 0x1bf   :  { %v119_v30 = vpop.eup %118 }
 0x1c0   :  { %v70_v31 = vmul.f32 0.6931472, %v119_v30 }
 0x1c2   :  { %v71_v34 = vadd.f32 %v70_v31, %v67_v32 }
 0x1c4   :  { %v73_v35 = vsub.f32 %v71_v34, %v72_v33 }
 0x1c6   :  { %v81_v36 = vsel %vm16_vm1, %v73_v35, 0.0 }
 0x1c7   :  { %82 = vadd.xlane.f32.xlu1 %v81_v36 }
 0x250   :  { %v83_v37 = vpop.xlane.xlu1 %82 }
 0x251   :  { %v84_v38 = vrot.slane %v83_v37, 4 }
 0x253   :  { %v85_v39 = vadd.f32 %v84_v38, %v83_v37 }
 0x255   :  { %v86_v40 = vrot.slane %v85_v39, 2 }
 0x257   :  { %v87_v41 = vadd.f32 %v86_v40, %v85_v39 }
 0x259   :  { %v88_v42 = vrot.slane %v87_v41, 1 }
 0x25b   :  { %v89_v43 = vadd.f32 %v88_v42, %v87_v41 }
 0x25d   :  { %106 = vpush %v89_v43 }
 0x28e   :  { %s107_s0 = spop %106 }
 0x28f   :  { %92 = sst [smem:[#allocation5]] %s107_s0 }
 0x290   :  { %100 = dma.smem_to_hbm %s133_s1, 16, %s170_s2, [#allocation6]  }
 0x291   :  { %128 = dma.done.wait [#allocation6], 16  }
 0x292   :  { %129 = vsyncadd [#allocation6], 4294967280 }
 0x293   :  { %104 = sfence }
 0x294   :  { %105 = vsyncpa [#allocation6], 1 }

</bundles_post_ra>
